<compile_context>
chip_gen: v5e
topology: v5e:2x2
jax: 0.10.0
libtpu: 0.0.40
codegen_flags: <defaults>
</compile_context>

<pallas_src>
import functools
import math

import jax
import jax.numpy as jnp
import numpy as np
from jax.experimental import pallas as pl
from jax.experimental.pallas import tpu as pltpu

# ---------------- model config (small, consistent with the module) ----------
DIM = 32
N_HEADS = 4
N_KV_HEADS = 2
HEAD_DIM = DIM // N_HEADS          # 8
N_REP = N_HEADS // N_KV_HEADS      # 2
NQ = N_HEADS * HEAD_DIM            # 32
NKV = N_KV_HEADS * HEAD_DIM        # 16
MAX_BATCH = 4
MAX_SEQ_LEN = 16
BATCH = 2
SEQ = 8
START_POS = 0                      # static prefill position
ROPE_THETA = 10000.0


# ---------------- fused Pallas kernel ----------------------------------------
def fused_mha_kernel(x_ref, wqkv_ref, wo_ref, cos_ref, sin_ref, pswap_ref,
                     ck_in_ref, cv_in_ref,
                     o_ref, ck_out_ref, cv_out_ref,
                     att_ref,
                     *, start_pos, batch, seq, n_heads, n_kv_heads, head_dim):
    n_rep = n_heads // n_kv_heads
    nq = n_heads * head_dim
    nkv = n_kv_heads * head_dim
    t_len = start_pos + seq

    # ---- fused QKV projection: one MXU pass (B*S, DIM) @ (DIM, NQ + 2*NKV)
    x = x_ref[...]
    qkv = jnp.dot(x, wqkv_ref[...], preferred_element_type=jnp.float32)
    q = qkv[:, :nq]
    k = qkv[:, nq:nq + nkv]
    v = qkv[:, nq + nkv:]

    # ---- RoPE (interleaved even/odd pairs).  cos/sin tables are pre-expanded
    # to (B*S, NQ); sin already carries the (-sin, +sin) sign pattern, and the
    # pair swap is a 0/1 permutation matmul on the MXU:
    #   rot(t) = t * cos + (t @ P_swap) * sin_signed
    cos = cos_ref[...]
    sin = sin_ref[...]
    pswap = pswap_ref[...]

    def rope(t, c, s, perm):
        t_sw = jnp.dot(t, perm, preferred_element_type=jnp.float32)
        return t * c + t_sw * s

    q = rope(q, cos, sin, pswap)
    k = rope(k, cos[:, :nkv], sin[:, :nkv], pswap[:nkv, :nkv])

    # ---- KV-cache write: only the [0:B, start_pos:start_pos+S] window is
    # written back (ck_out/cv_out are windowed blocks aliased with the inputs).
    for b in range(batch):
        ck_out_ref[b] = k[b * seq:(b + 1) * seq, :]
        cv_out_ref[b] = v[b * seq:(b + 1) * seq, :]

    # ---- causal GQA attention, all (batch, head) pairs in this one invocation
    scale = jnp.float32(1.0 / math.sqrt(head_dim))
    neg_big = jnp.float32(-1e30)   # finite mask value -> no NaN on masked rows
    row = jax.lax.broadcasted_iota(jnp.int32, (seq, t_len), 0)
    col = jax.lax.broadcasted_iota(jnp.int32, (seq, t_len), 1)
    causal_ok = col <= row + start_pos

    for b in range(batch):
        for h in range(n_heads):
            g = h // n_rep                       # GQA: kv head for this q head
            q_h = q[b * seq:(b + 1) * seq, h * head_dim:(h + 1) * head_dim]
            k_new = k[b * seq:(b + 1) * seq, g * head_dim:(g + 1) * head_dim]
            v_new = v[b * seq:(b + 1) * seq, g * head_dim:(g + 1) * head_dim]
            if start_pos > 0:
                # prepend previously cached positions [0, start_pos)
                k_old = ck_in_ref[b, 0:start_pos,
                                  g * head_dim:(g + 1) * head_dim]
                v_old = cv_in_ref[b, 0:start_pos,
                                  g * head_dim:(g + 1) * head_dim]
                k_h = jnp.concatenate([k_old, k_new], axis=0)
                v_h = jnp.concatenate([v_old, v_new], axis=0)
            else:
                k_h, v_h = k_new, v_new

            s = jax.lax.dot_general(
                q_h, k_h, (((1,), (1,)), ((), ())),
                preferred_element_type=jnp.float32) * scale        # (S, T)
            s = jnp.where(causal_ok, s, neg_big)
            m = jnp.max(s, axis=-1, keepdims=True)
            p = jnp.exp(s - m)
            denom = jnp.sum(p, axis=-1, keepdims=True)
            p = p * pl.reciprocal(denom, approx=True)              # EUP slot
            o_h = jnp.dot(p, v_h, preferred_element_type=jnp.float32)  # (S, D)
            # assemble a lane-dense (B*S, H*D) slab in VMEM scratch
            att_ref[b * seq:(b + 1) * seq,
                    h * head_dim:(h + 1) * head_dim] = o_h

    # ---- output projection fused into the same kernel
    o_ref[...] = jnp.dot(att_ref[...], wo_ref[...],
                         preferred_element_type=jnp.float32)


# ---------------- wrapper -----------------------------------------------------
@functools.partial(jax.jit, static_argnames=("start_pos",),
                   donate_argnames=("cache_k", "cache_v"))
def mha_forward(x, wqkv_t, wo_t, cos_bs, sin_bs, pswap, cache_k, cache_v,
                start_pos):
    """Fused GQA attention block.  cache_k/cache_v: (MAX_BATCH, MAX_SEQ_LEN, NKV)."""
    B, S, _ = x.shape
    if start_pos % S != 0:
        # TODO(synk): non-block-aligned decode positions need a scalar-prefetch
        # index on the cache window; not required for this static prefill demo.
        raise NotImplementedError("start_pos must be a multiple of seq_len")
    sp_blk = start_pos // S
    x2d = x.reshape(B * S, DIM)

    kernel = functools.partial(
        fused_mha_kernel, start_pos=start_pos, batch=B, seq=S,
        n_heads=N_HEADS, n_kv_heads=N_KV_HEADS, head_dim=HEAD_DIM)

    out2d, new_ck, new_cv = pl.pallas_call(
        kernel,
        out_shape=(
            jax.ShapeDtypeStruct((B * S, DIM), jnp.float32),
            jax.ShapeDtypeStruct(cache_k.shape, cache_k.dtype),
            jax.ShapeDtypeStruct(cache_v.shape, cache_v.dtype),
        ),
        grid=(1,),
        in_specs=[
            pl.BlockSpec((B * S, DIM), lambda i: (0, 0)),            # x2d
            pl.BlockSpec((DIM, NQ + 2 * NKV), lambda i: (0, 0)),     # wqkv_t
            pl.BlockSpec((NQ, DIM), lambda i: (0, 0)),               # wo_t
            pl.BlockSpec((B * S, NQ), lambda i: (0, 0)),             # cos
            pl.BlockSpec((B * S, NQ), lambda i: (0, 0)),             # sin (signed)
            pl.BlockSpec((NQ, NQ), lambda i: (0, 0)),                # pair-swap P
            pl.BlockSpec(cache_k.shape, lambda i: (0, 0, 0)),        # cache_k (old)
            pl.BlockSpec(cache_v.shape, lambda i: (0, 0, 0)),        # cache_v (old)
        ],
        out_specs=(
            pl.BlockSpec((B * S, DIM), lambda i: (0, 0)),
            # windowed cache writes: only [0:B, start_pos:start_pos+S, :]
            pl.BlockSpec((B, S, NKV), lambda i: (0, sp_blk, 0)),
            pl.BlockSpec((B, S, NKV), lambda i: (0, sp_blk, 0)),
        ),
        scratch_shapes=[pltpu.VMEM((B * S, NQ), jnp.float32)],
        input_output_aliases={6: 1, 7: 2},   # in-place KV-cache update
        compiler_params=pltpu.CompilerParams(
            dimension_semantics=("arbitrary",)),
    )(x2d, wqkv_t, wo_t, cos_bs, sin_bs, pswap, cache_k, cache_v)

    return out2d.reshape(B, S, DIM), new_ck, new_cv


# ---------------- pure-JAX reference (mirrors the PyTorch module) ------------
def apply_rope_ref(xh, cos, sin):
    # xh: (B, S, H, D); cos/sin: (S, D//2). Matches torch view_as_complex path.
    xe = xh[..., 0::2]
    xo = xh[..., 1::2]
    c = cos[None, :, None, :]
    s = sin[None, :, None, :]
    oe = xe * c - xo * s
    oo = xe * s + xo * c
    return jnp.stack([oe, oo], axis=-1).reshape(xh.shape)


def reference_forward(x, wq, wk, wv, wo, cache_k, cache_v, start_pos):
    B, S, _ = x.shape
    q = (x @ wq.T).reshape(B, S, N_HEADS, HEAD_DIM)
    k = (x @ wk.T).reshape(B, S, N_KV_HEADS, HEAD_DIM)
    v = (x @ wv.T).reshape(B, S, N_KV_HEADS, HEAD_DIM)
    inv_freq = 1.0 / (ROPE_THETA ** (
        jnp.arange(0, HEAD_DIM, 2, dtype=jnp.float32) / HEAD_DIM))
    pos = jnp.arange(start_pos, start_pos + S, dtype=jnp.float32)
    ang = pos[:, None] * inv_freq[None, :]
    cos, sin = jnp.cos(ang), jnp.sin(ang)
    q = apply_rope_ref(q, cos, sin)
    k = apply_rope_ref(k, cos, sin)
    cache_k = cache_k.at[:B, start_pos:start_pos + S].set(k)
    cache_v = cache_v.at[:B, start_pos:start_pos + S].set(v)
    keys = jnp.repeat(cache_k[:B, :start_pos + S], N_REP, axis=2)
    values = jnp.repeat(cache_v[:B, :start_pos + S], N_REP, axis=2)
    qh = q.transpose(0, 2, 1, 3)
    kh = keys.transpose(0, 2, 1, 3)
    vh = values.transpose(0, 2, 1, 3)
    scores = (qh @ kh.transpose(0, 1, 3, 2)) / math.sqrt(HEAD_DIM)
    T = start_pos + S
    if S > 1:
        mask = jnp.triu(jnp.full((S, T), -jnp.inf, dtype=jnp.float32),
                        k=start_pos + 1)
        scores = scores + mask[None, None]
    attn = jax.nn.softmax(scores, axis=-1)
    out = (attn @ vh).transpose(0, 2, 1, 3).reshape(B, S, NQ)
    return out @ wo.T, cache_k, cache_v


# ---------------- main --------------------------------------------------------
if __name__ == "__main__":
    key = jax.random.PRNGKey(0)
    kx, kq, kk, kv, ko = jax.random.split(key, 5)
    x = jax.random.normal(kx, (BATCH, SEQ, DIM), jnp.float32)
    wq = jax.random.normal(kq, (NQ, DIM), jnp.float32) * 0.05
    wk = jax.random.normal(kk, (NKV, DIM), jnp.float32) * 0.05
    wv = jax.random.normal(kv, (NKV, DIM), jnp.float32) * 0.05
    wo = jax.random.normal(ko, (DIM, NQ), jnp.float32) * 0.05

    # ---- init-time weight prep: fused QKV weight, pre-transposed to (K, N)
    wqkv_t = jnp.concatenate([wq, wk, wv], axis=0).T        # (DIM, NQ + 2*NKV)
    wo_t = wo.T                                             # (NQ, DIM)

    # ---- init-time RoPE tables for positions [START_POS, START_POS + SEQ)
    inv_freq = 1.0 / (ROPE_THETA ** (
        np.arange(0, HEAD_DIM, 2, dtype=np.float32) / HEAD_DIM))
    pos = np.arange(START_POS, START_POS + SEQ, dtype=np.float32)
    ang = pos[:, None] * inv_freq[None, :]                  # (S, D/2)
    cos_d = np.repeat(np.cos(ang), 2, axis=1)               # [c0,c0,c1,c1,...]
    sin_d = np.stack([-np.sin(ang), np.sin(ang)], axis=-1).reshape(SEQ, HEAD_DIM)
    cos_bs = jnp.asarray(np.tile(np.tile(cos_d, (1, N_HEADS)), (BATCH, 1)),
                         dtype=jnp.float32)                 # (B*S, NQ)
    sin_bs = jnp.asarray(np.tile(np.tile(sin_d, (1, N_HEADS)), (BATCH, 1)),
                         dtype=jnp.float32)
    # pair-swap permutation (block-diagonal [[0,1],[1,0]])
    idx = np.arange(NQ)
    pswap_np = np.zeros((NQ, NQ), np.float32)
    pswap_np[idx, idx ^ 1] = 1.0
    pswap = jnp.asarray(pswap_np)

    # KV cache (head dims flattened to keep the cache lane-dense in VMEM;
    # element order is identical to the module's (mb, msl, n_kv, hd) buffer)
    cache_k = jnp.zeros((MAX_BATCH, MAX_SEQ_LEN, NKV), jnp.float32)
    cache_v = jnp.zeros_like(cache_k)

    out, new_ck, new_cv = mha_forward(
        x, wqkv_t, wo_t, cos_bs, sin_bs, pswap,
        cache_k=cache_k, cache_v=cache_v, start_pos=START_POS)
    out = jax.block_until_ready(out)

    # ---- correctness vs. pure-JAX reference of the PyTorch module
    ref_ck = jnp.zeros((MAX_BATCH, MAX_SEQ_LEN, N_KV_HEADS, HEAD_DIM),
                       jnp.float32)
    ref_cv = jnp.zeros_like(ref_ck)
    ref_out, ref_ck, ref_cv = reference_forward(
        x, wq, wk, wv, wo, ref_ck, ref_cv, START_POS)

    np.testing.assert_allclose(np.asarray(out), np.asarray(ref_out),
                               atol=2e-3, rtol=2e-3)
    np.testing.assert_allclose(
        np.asarray(new_ck).reshape(MAX_BATCH, MAX_SEQ_LEN, N_KV_HEADS, HEAD_DIM),
        np.asarray(ref_ck), atol=5e-4, rtol=5e-4)
    np.testing.assert_allclose(
        np.asarray(new_cv).reshape(MAX_BATCH, MAX_SEQ_LEN, N_KV_HEADS, HEAD_DIM),
        np.asarray(ref_cv), atol=5e-4, rtol=5e-4)
    print("KERNEL_OK")
</pallas_src>

<mosaic_0001>
module attributes {stable_mosaic.version = 11 : i64} {
  func.func @fused_mha_kernel(%arg0: i32, %arg1: memref<16x32xf32, #tpu.memory_space<vmem>>, %arg2: memref<32x64xf32, #tpu.memory_space<vmem>>, %arg3: memref<32x32xf32, #tpu.memory_space<vmem>>, %arg4: memref<16x32xf32, #tpu.memory_space<vmem>>, %arg5: memref<16x32xf32, #tpu.memory_space<vmem>>, %arg6: memref<32x32xf32, #tpu.memory_space<vmem>>, %arg7: memref<4x16x16xf32, #tpu.memory_space<vmem>>, %arg8: memref<4x16x16xf32, #tpu.memory_space<vmem>>, %arg9: memref<16x32xf32, #tpu.memory_space<vmem>>, %arg10: memref<2x8x16xf32, #tpu.memory_space<vmem>>, %arg11: memref<2x8x16xf32, #tpu.memory_space<vmem>>, %arg12: memref<16x32xf32, #tpu.memory_space<vmem>>) attributes {dimension_semantics = [#tpu.dimension_semantics<arbitrary>], iteration_bounds = array<i64: 1>, scalar_prefetch = 0 : i64, scratch_operands = 1 : i64, tpu.core_type = #tpu.core_type<tc>, window_params = [{pipeline_mode = #tpu.pipeline_mode<synchronous>, transform_indices = @transform_0, window_bounds = array<i64: 16, 32>}, {pipeline_mode = #tpu.pipeline_mode<synchronous>, transform_indices = @transform_1, window_bounds = array<i64: 32, 64>}, {pipeline_mode = #tpu.pipeline_mode<synchronous>, transform_indices = @transform_2, window_bounds = array<i64: 32, 32>}, {pipeline_mode = #tpu.pipeline_mode<synchronous>, transform_indices = @transform_3, window_bounds = array<i64: 16, 32>}, {pipeline_mode = #tpu.pipeline_mode<synchronous>, transform_indices = @transform_4, window_bounds = array<i64: 16, 32>}, {pipeline_mode = #tpu.pipeline_mode<synchronous>, transform_indices = @transform_5, window_bounds = array<i64: 32, 32>}, {pipeline_mode = #tpu.pipeline_mode<synchronous>, transform_indices = @transform_6, window_bounds = array<i64: 4, 16, 16>}, {pipeline_mode = #tpu.pipeline_mode<synchronous>, transform_indices = @transform_7, window_bounds = array<i64: 4, 16, 16>}, {pipeline_mode = #tpu.pipeline_mode<synchronous>, transform_indices = @transform_8, window_bounds = array<i64: 16, 32>}, {transform_indices = @transform_9, window_bounds = array<i64: 2, 8, 16>}, {transform_indices = @transform_10, window_bounds = array<i64: 2, 8, 16>}]} {
    %c0 = arith.constant 0 : index
    %c0_0 = arith.constant 0 : index
    %0 = vector.load %arg1[%c0, %c0_0] : memref<16x32xf32, #tpu.memory_space<vmem>>, vector<16x32xf32>
    %c0_1 = arith.constant 0 : index
    %c0_2 = arith.constant 0 : index
    %1 = vector.load %arg2[%c0_1, %c0_2] : memref<32x64xf32, #tpu.memory_space<vmem>>, vector<32x64xf32>
    %cst = arith.constant dense<0.000000e+00> : vector<16x64xf32>
    %2 = tpu.matmul %0, %1, %cst {dimension_numbers = #tpu.dot_dimension_numbers<[1], [0], [0], [1], [0, 0, 1, 1], [], []>} : vector<16x32xf32>, vector<32x64xf32>, vector<16x64xf32> -> vector<16x64xf32>
    %3 = vector.extract_strided_slice %2 {offsets = [0, 0], sizes = [16, 32], strides = [1, 1]} : vector<16x64xf32> to vector<16x32xf32>
    %4 = vector.extract_strided_slice %2 {offsets = [0, 32], sizes = [16, 16], strides = [1, 1]} : vector<16x64xf32> to vector<16x16xf32>
    %5 = vector.extract_strided_slice %2 {offsets = [0, 48], sizes = [16, 16], strides = [1, 1]} : vector<16x64xf32> to vector<16x16xf32>
    %c0_3 = arith.constant 0 : index
    %c0_4 = arith.constant 0 : index
    %6 = vector.load %arg4[%c0_3, %c0_4] : memref<16x32xf32, #tpu.memory_space<vmem>>, vector<16x32xf32>
    %c0_5 = arith.constant 0 : index
    %c0_6 = arith.constant 0 : index
    %7 = vector.load %arg5[%c0_5, %c0_6] : memref<16x32xf32, #tpu.memory_space<vmem>>, vector<16x32xf32>
    %c0_7 = arith.constant 0 : index
    %c0_8 = arith.constant 0 : index
    %8 = vector.load %arg6[%c0_7, %c0_8] : memref<32x32xf32, #tpu.memory_space<vmem>>, vector<32x32xf32>
    %cst_9 = arith.constant dense<0.000000e+00> : vector<16x32xf32>
    %9 = tpu.matmul %3, %8, %cst_9 {dimension_numbers = #tpu.dot_dimension_numbers<[1], [0], [0], [1], [0, 0, 1, 1], [], []>} : vector<16x32xf32>, vector<32x32xf32>, vector<16x32xf32> -> vector<16x32xf32>
    %10 = arith.mulf %3, %6 : vector<16x32xf32>
    %11 = arith.mulf %9, %7 : vector<16x32xf32>
    %12 = arith.addf %10, %11 : vector<16x32xf32>
    %13 = vector.extract_strided_slice %6 {offsets = [0, 0], sizes = [16, 16], strides = [1, 1]} : vector<16x32xf32> to vector<16x16xf32>
    %14 = vector.extract_strided_slice %7 {offsets = [0, 0], sizes = [16, 16], strides = [1, 1]} : vector<16x32xf32> to vector<16x16xf32>
    %15 = vector.extract_strided_slice %8 {offsets = [0, 0], sizes = [16, 16], strides = [1, 1]} : vector<32x32xf32> to vector<16x16xf32>
    %cst_10 = arith.constant dense<0.000000e+00> : vector<16x16xf32>
    %16 = tpu.matmul %4, %15, %cst_10 {dimension_numbers = #tpu.dot_dimension_numbers<[1], [0], [0], [1], [0, 0, 1, 1], [], []>} : vector<16x16xf32>, vector<16x16xf32>, vector<16x16xf32> -> vector<16x16xf32>
    %17 = arith.mulf %4, %13 : vector<16x16xf32>
    %18 = arith.mulf %16, %14 : vector<16x16xf32>
    %19 = arith.addf %17, %18 : vector<16x16xf32>
    %20 = vector.extract_strided_slice %19 {offsets = [0, 0], sizes = [8, 16], strides = [1, 1]} : vector<16x16xf32> to vector<8x16xf32>
    %c0_11 = arith.constant 0 : index
    %c0_12 = arith.constant 0 : index
    %c0_13 = arith.constant 0 : index
    %21 = vector.load %arg10[%c0_11, %c0_12, %c0_13] : memref<2x8x16xf32, #tpu.memory_space<vmem>>, vector<1x8x16xf32>
    %22 = vector.shape_cast %21 : vector<1x8x16xf32> to vector<8x16xf32>
    %23 = vector.shape_cast %20 : vector<8x16xf32> to vector<1x8x16xf32>
    tpu.vector_store %arg10[%c0_11, %c0_12, %c0_13], %23 {strides = array<i32>} : memref<2x8x16xf32, #tpu.memory_space<vmem>>, vector<1x8x16xf32>,
    %24 = vector.extract_strided_slice %5 {offsets = [0, 0], sizes = [8, 16], strides = [1, 1]} : vector<16x16xf32> to vector<8x16xf32>
    %c0_14 = arith.constant 0 : index
    %c0_15 = arith.constant 0 : index
    %c0_16 = arith.constant 0 : index
    %25 = vector.load %arg11[%c0_14, %c0_15, %c0_16] : memref<2x8x16xf32, #tpu.memory_space<vmem>>, vector<1x8x16xf32>
    %26 = vector.shape_cast %25 : vector<1x8x16xf32> to vector<8x16xf32>
    %27 = vector.shape_cast %24 : vector<8x16xf32> to vector<1x8x16xf32>
    tpu.vector_store %arg11[%c0_14, %c0_15, %c0_16], %27 {strides = array<i32>} : memref<2x8x16xf32, #tpu.memory_space<vmem>>, vector<1x8x16xf32>,
    %28 = vector.extract_strided_slice %19 {offsets = [8, 0], sizes = [8, 16], strides = [1, 1]} : vector<16x16xf32> to vector<8x16xf32>
    %c1 = arith.constant 1 : index
    %c0_17 = arith.constant 0 : index
    %c0_18 = arith.constant 0 : index
    %29 = vector.load %arg10[%c1, %c0_17, %c0_18] : memref<2x8x16xf32, #tpu.memory_space<vmem>>, vector<1x8x16xf32>
    %30 = vector.shape_cast %29 : vector<1x8x16xf32> to vector<8x16xf32>
    %31 = vector.shape_cast %28 : vector<8x16xf32> to vector<1x8x16xf32>
    tpu.vector_store %arg10[%c1, %c0_17, %c0_18], %31 {strides = array<i32>} : memref<2x8x16xf32, #tpu.memory_space<vmem>>, vector<1x8x16xf32>,
    %32 = vector.extract_strided_slice %5 {offsets = [8, 0], sizes = [8, 16], strides = [1, 1]} : vector<16x16xf32> to vector<8x16xf32>
    %c1_19 = arith.constant 1 : index
    %c0_20 = arith.constant 0 : index
    %c0_21 = arith.constant 0 : index
    %33 = vector.load %arg11[%c1_19, %c0_20, %c0_21] : memref<2x8x16xf32, #tpu.memory_space<vmem>>, vector<1x8x16xf32>
    %34 = vector.shape_cast %33 : vector<1x8x16xf32> to vector<8x16xf32>
    %35 = vector.shape_cast %32 : vector<8x16xf32> to vector<1x8x16xf32>
    tpu.vector_store %arg11[%c1_19, %c0_20, %c0_21], %35 {strides = array<i32>} : memref<2x8x16xf32, #tpu.memory_space<vmem>>, vector<1x8x16xf32>,
    %36 = tpu.iota {dimensions = array<i32: 0>} : vector<8x8xi32>
    %37 = tpu.iota {dimensions = array<i32: 1>} : vector<8x8xi32>
    %c0_i32 = arith.constant 0 : i32
    %38 = vector.broadcast %c0_i32 : i32 to vector<8x8xi32>
    %39 = arith.addi %36, %38 : vector<8x8xi32>
    %40 = arith.cmpi sle, %37, %39 : vector<8x8xi32>
    %41 = vector.extract_strided_slice %12 {offsets = [0, 0], sizes = [8, 8], strides = [1, 1]} : vector<16x32xf32> to vector<8x8xf32>
    %42 = vector.extract_strided_slice %19 {offsets = [0, 0], sizes = [8, 8], strides = [1, 1]} : vector<16x16xf32> to vector<8x8xf32>
    %43 = vector.extract_strided_slice %5 {offsets = [0, 0], sizes = [8, 8], strides = [1, 1]} : vector<16x16xf32> to vector<8x8xf32>
    %cst_22 = arith.constant dense<0.000000e+00> : vector<8x8xf32>
    %44 = tpu.matmul %41, %42, %cst_22 {dimension_numbers = #tpu.dot_dimension_numbers<[1], [1], [0], [0], [0, 0, 1, 0], [], []>} : vector<8x8xf32>, vector<8x8xf32>, vector<8x8xf32> -> vector<8x8xf32>
    %cst_23 = arith.constant 0.353553385 : f32
    %45 = vector.broadcast %cst_23 : f32 to vector<8x8xf32>
    %46 = arith.mulf %44, %45 : vector<8x8xf32>
    %cst_24 = arith.constant -1.000000e+30 : f32
    %47 = vector.broadcast %cst_24 : f32 to vector<8x8xf32>
    %48 = arith.select %40, %46, %47 : vector<8x8xi1>, vector<8x8xf32>
    %cst_25 = arith.constant dense<0xFF800000> : vector<8xf32>
    %49 = vector.multi_reduction <maximumf>, %48, %cst_25 [1] : vector<8x8xf32> to vector<8xf32>
    %50 = vector.shape_cast %49 : vector<8xf32> to vector<8x1xf32>
    %51 = vector.broadcast %50 : vector<8x1xf32> to vector<8x8xf32>
    %52 = arith.subf %48, %51 : vector<8x8xf32>
    %53 = math.exp %52 : vector<8x8xf32>
    %cst_26 = arith.constant dense<0.000000e+00> : vector<8xf32>
    %54 = vector.multi_reduction <add>, %53, %cst_26 [1] : vector<8x8xf32> to vector<8xf32>
    %55 = vector.shape_cast %54 : vector<8xf32> to vector<8x1xf32>
    %56 = tpu.reciprocal %55 {approx = true} : vector<8x1xf32> -> vector<8x1xf32>
    %57 = vector.broadcast %56 : vector<8x1xf32> to vector<8x8xf32>
    %58 = arith.mulf %53, %57 : vector<8x8xf32>
    %cst_27 = arith.constant dense<0.000000e+00> : vector<8x8xf32>
    %59 = tpu.matmul %58, %43, %cst_27 {dimension_numbers = #tpu.dot_dimension_numbers<[1], [0], [0], [1], [0, 0, 1, 1], [], []>} : vector<8x8xf32>, vector<8x8xf32>, vector<8x8xf32> -> vector<8x8xf32>
    %c0_28 = arith.constant 0 : index
    %c0_29 = arith.constant 0 : index
    %60 = vector.load %arg12[%c0_28, %c0_29] : memref<16x32xf32, #tpu.memory_space<vmem>>, vector<8x8xf32>
    tpu.vector_store %arg12[%c0_28, %c0_29], %59 {strides = array<i32>} : memref<16x32xf32, #tpu.memory_space<vmem>>, vector<8x8xf32>,
    %61 = vector.extract_strided_slice %12 {offsets = [0, 8], sizes = [8, 8], strides = [1, 1]} : vector<16x32xf32> to vector<8x8xf32>
    %62 = vector.extract_strided_slice %19 {offsets = [0, 0], sizes = [8, 8], strides = [1, 1]} : vector<16x16xf32> to vector<8x8xf32>
    %63 = vector.extract_strided_slice %5 {offsets = [0, 0], sizes = [8, 8], strides = [1, 1]} : vector<16x16xf32> to vector<8x8xf32>
    %cst_30 = arith.constant dense<0.000000e+00> : vector<8x8xf32>
    %64 = tpu.matmul %61, %62, %cst_30 {dimension_numbers = #tpu.dot_dimension_numbers<[1], [1], [0], [0], [0, 0, 1, 0], [], []>} : vector<8x8xf32>, vector<8x8xf32>, vector<8x8xf32> -> vector<8x8xf32>
    %cst_31 = arith.constant 0.353553385 : f32
    %65 = vector.broadcast %cst_31 : f32 to vector<8x8xf32>
    %66 = arith.mulf %64, %65 : vector<8x8xf32>
    %cst_32 = arith.constant -1.000000e+30 : f32
    %67 = vector.broadcast %cst_32 : f32 to vector<8x8xf32>
    %68 = arith.select %40, %66, %67 : vector<8x8xi1>, vector<8x8xf32>
    %cst_33 = arith.constant dense<0xFF800000> : vector<8xf32>
    %69 = vector.multi_reduction <maximumf>, %68, %cst_33 [1] : vector<8x8xf32> to vector<8xf32>
    %70 = vector.shape_cast %69 : vector<8xf32> to vector<8x1xf32>
    %71 = vector.broadcast %70 : vector<8x1xf32> to vector<8x8xf32>
    %72 = arith.subf %68, %71 : vector<8x8xf32>
    %73 = math.exp %72 : vector<8x8xf32>
    %cst_34 = arith.constant dense<0.000000e+00> : vector<8xf32>
    %74 = vector.multi_reduction <add>, %73, %cst_34 [1] : vector<8x8xf32> to vector<8xf32>
    %75 = vector.shape_cast %74 : vector<8xf32> to vector<8x1xf32>
    %76 = tpu.reciprocal %75 {approx = true} : vector<8x1xf32> -> vector<8x1xf32>
    %77 = vector.broadcast %76 : vector<8x1xf32> to vector<8x8xf32>
    %78 = arith.mulf %73, %77 : vector<8x8xf32>
    %cst_35 = arith.constant dense<0.000000e+00> : vector<8x8xf32>
    %79 = tpu.matmul %78, %63, %cst_35 {dimension_numbers = #tpu.dot_dimension_numbers<[1], [0], [0], [1], [0, 0, 1, 1], [], []>} : vector<8x8xf32>, vector<8x8xf32>, vector<8x8xf32> -> vector<8x8xf32>
    %c0_36 = arith.constant 0 : index
    %c8 = arith.constant 8 : index
    %80 = vector.load %arg12[%c0_36, %c8] : memref<16x32xf32, #tpu.memory_space<vmem>>, vector<8x8xf32>
    tpu.vector_store %arg12[%c0_36, %c8], %79 {strides = array<i32>} : memref<16x32xf32, #tpu.memory_space<vmem>>, vector<8x8xf32>,
    %81 = vector.extract_strided_slice %12 {offsets = [0, 16], sizes = [8, 8], strides = [1, 1]} : vector<16x32xf32> to vector<8x8xf32>
    %82 = vector.extract_strided_slice %19 {offsets = [0, 8], sizes = [8, 8], strides = [1, 1]} : vector<16x16xf32> to vector<8x8xf32>
    %83 = vector.extract_strided_slice %5 {offsets = [0, 8], sizes = [8, 8], strides = [1, 1]} : vector<16x16xf32> to vector<8x8xf32>
    %cst_37 = arith.constant dense<0.000000e+00> : vector<8x8xf32>
    %84 = tpu.matmul %81, %82, %cst_37 {dimension_numbers = #tpu.dot_dimension_numbers<[1], [1], [0], [0], [0, 0, 1, 0], [], []>} : vector<8x8xf32>, vector<8x8xf32>, vector<8x8xf32> -> vector<8x8xf32>
    %cst_38 = arith.constant 0.353553385 : f32
    %85 = vector.broadcast %cst_38 : f32 to vector<8x8xf32>
    %86 = arith.mulf %84, %85 : vector<8x8xf32>
    %cst_39 = arith.constant -1.000000e+30 : f32
    %87 = vector.broadcast %cst_39 : f32 to vector<8x8xf32>
    %88 = arith.select %40, %86, %87 : vector<8x8xi1>, vector<8x8xf32>
    %cst_40 = arith.constant dense<0xFF800000> : vector<8xf32>
    %89 = vector.multi_reduction <maximumf>, %88, %cst_40 [1] : vector<8x8xf32> to vector<8xf32>
    %90 = vector.shape_cast %89 : vector<8xf32> to vector<8x1xf32>
    %91 = vector.broadcast %90 : vector<8x1xf32> to vector<8x8xf32>
    %92 = arith.subf %88, %91 : vector<8x8xf32>
    %93 = math.exp %92 : vector<8x8xf32>
    %cst_41 = arith.constant dense<0.000000e+00> : vector<8xf32>
    %94 = vector.multi_reduction <add>, %93, %cst_41 [1] : vector<8x8xf32> to vector<8xf32>
    %95 = vector.shape_cast %94 : vector<8xf32> to vector<8x1xf32>
    %96 = tpu.reciprocal %95 {approx = true} : vector<8x1xf32> -> vector<8x1xf32>
    %97 = vector.broadcast %96 : vector<8x1xf32> to vector<8x8xf32>
    %98 = arith.mulf %93, %97 : vector<8x8xf32>
    %cst_42 = arith.constant dense<0.000000e+00> : vector<8x8xf32>
    %99 = tpu.matmul %98, %83, %cst_42 {dimension_numbers = #tpu.dot_dimension_numbers<[1], [0], [0], [1], [0, 0, 1, 1], [], []>} : vector<8x8xf32>, vector<8x8xf32>, vector<8x8xf32> -> vector<8x8xf32>
    %c0_43 = arith.constant 0 : index
    %c16 = arith.constant 16 : index
    %100 = vector.load %arg12[%c0_43, %c16] : memref<16x32xf32, #tpu.memory_space<vmem>>, vector<8x8xf32>
    tpu.vector_store %arg12[%c0_43, %c16], %99 {strides = array<i32>} : memref<16x32xf32, #tpu.memory_space<vmem>>, vector<8x8xf32>,
    %101 = vector.extract_strided_slice %12 {offsets = [0, 24], sizes = [8, 8], strides = [1, 1]} : vector<16x32xf32> to vector<8x8xf32>
    %102 = vector.extract_strided_slice %19 {offsets = [0, 8], sizes = [8, 8], strides = [1, 1]} : vector<16x16xf32> to vector<8x8xf32>
    %103 = vector.extract_strided_slice %5 {offsets = [0, 8], sizes = [8, 8], strides = [1, 1]} : vector<16x16xf32> to vector<8x8xf32>
    %cst_44 = arith.constant dense<0.000000e+00> : vector<8x8xf32>
    %104 = tpu.matmul %101, %102, %cst_44 {dimension_numbers = #tpu.dot_dimension_numbers<[1], [1], [0], [0], [0, 0, 1, 0], [], []>} : vector<8x8xf32>, vector<8x8xf32>, vector<8x8xf32> -> vector<8x8xf32>
    %cst_45 = arith.constant 0.353553385 : f32
    %105 = vector.broadcast %cst_45 : f32 to vector<8x8xf32>
    %106 = arith.mulf %104, %105 : vector<8x8xf32>
    %cst_46 = arith.constant -1.000000e+30 : f32
    %107 = vector.broadcast %cst_46 : f32 to vector<8x8xf32>
    %108 = arith.select %40, %106, %107 : vector<8x8xi1>, vector<8x8xf32>
    %cst_47 = arith.constant dense<0xFF800000> : vector<8xf32>
    %109 = vector.multi_reduction <maximumf>, %108, %cst_47 [1] : vector<8x8xf32> to vector<8xf32>
    %110 = vector.shape_cast %109 : vector<8xf32> to vector<8x1xf32>
    %111 = vector.broadcast %110 : vector<8x1xf32> to vector<8x8xf32>
    %112 = arith.subf %108, %111 : vector<8x8xf32>
    %113 = math.exp %112 : vector<8x8xf32>
    %cst_48 = arith.constant dense<0.000000e+00> : vector<8xf32>
    %114 = vector.multi_reduction <add>, %113, %cst_48 [1] : vector<8x8xf32> to vector<8xf32>
    %115 = vector.shape_cast %114 : vector<8xf32> to vector<8x1xf32>
    %116 = tpu.reciprocal %115 {approx = true} : vector<8x1xf32> -> vector<8x1xf32>
    %117 = vector.broadcast %116 : vector<8x1xf32> to vector<8x8xf32>
    %118 = arith.mulf %113, %117 : vector<8x8xf32>
    %cst_49 = arith.constant dense<0.000000e+00> : vector<8x8xf32>
    %119 = tpu.matmul %118, %103, %cst_49 {dimension_numbers = #tpu.dot_dimension_numbers<[1], [0], [0], [1], [0, 0, 1, 1], [], []>} : vector<8x8xf32>, vector<8x8xf32>, vector<8x8xf32> -> vector<8x8xf32>
    %c0_50 = arith.constant 0 : index
    %c24 = arith.constant 24 : index
    %120 = vector.load %arg12[%c0_50, %c24] : memref<16x32xf32, #tpu.memory_space<vmem>>, vector<8x8xf32>
    tpu.vector_store %arg12[%c0_50, %c24], %119 {strides = array<i32>} : memref<16x32xf32, #tpu.memory_space<vmem>>, vector<8x8xf32>,
    %121 = vector.extract_strided_slice %12 {offsets = [8, 0], sizes = [8, 8], strides = [1, 1]} : vector<16x32xf32> to vector<8x8xf32>
    %122 = vector.extract_strided_slice %19 {offsets = [8, 0], sizes = [8, 8], strides = [1, 1]} : vector<16x16xf32> to vector<8x8xf32>
    %123 = vector.extract_strided_slice %5 {offsets = [8, 0], sizes = [8, 8], strides = [1, 1]} : vector<16x16xf32> to vector<8x8xf32>
    %cst_51 = arith.constant dense<0.000000e+00> : vector<8x8xf32>
    %124 = tpu.matmul %121, %122, %cst_51 {dimension_numbers = #tpu.dot_dimension_numbers<[1], [1], [0], [0], [0, 0, 1, 0], [], []>} : vector<8x8xf32>, vector<8x8xf32>, vector<8x8xf32> -> vector<8x8xf32>
    %cst_52 = arith.constant 0.353553385 : f32
    %125 = vector.broadcast %cst_52 : f32 to vector<8x8xf32>
    %126 = arith.mulf %124, %125 : vector<8x8xf32>
    %cst_53 = arith.constant -1.000000e+30 : f32
    %127 = vector.broadcast %cst_53 : f32 to vector<8x8xf32>
    %128 = arith.select %40, %126, %127 : vector<8x8xi1>, vector<8x8xf32>
    %cst_54 = arith.constant dense<0xFF800000> : vector<8xf32>
    %129 = vector.multi_reduction <maximumf>, %128, %cst_54 [1] : vector<8x8xf32> to vector<8xf32>
    %130 = vector.shape_cast %129 : vector<8xf32> to vector<8x1xf32>
    %131 = vector.broadcast %130 : vector<8x1xf32> to vector<8x8xf32>
    %132 = arith.subf %128, %131 : vector<8x8xf32>
    %133 = math.exp %132 : vector<8x8xf32>
    %cst_55 = arith.constant dense<0.000000e+00> : vector<8xf32>
    %134 = vector.multi_reduction <add>, %133, %cst_55 [1] : vector<8x8xf32> to vector<8xf32>
    %135 = vector.shape_cast %134 : vector<8xf32> to vector<8x1xf32>
    %136 = tpu.reciprocal %135 {approx = true} : vector<8x1xf32> -> vector<8x1xf32>
    %137 = vector.broadcast %136 : vector<8x1xf32> to vector<8x8xf32>
    %138 = arith.mulf %133, %137 : vector<8x8xf32>
    %cst_56 = arith.constant dense<0.000000e+00> : vector<8x8xf32>
    %139 = tpu.matmul %138, %123, %cst_56 {dimension_numbers = #tpu.dot_dimension_numbers<[1], [0], [0], [1], [0, 0, 1, 1], [], []>} : vector<8x8xf32>, vector<8x8xf32>, vector<8x8xf32> -> vector<8x8xf32>
    %c8_57 = arith.constant 8 : index
    %c0_58 = arith.constant 0 : index
    %140 = vector.load %arg12[%c8_57, %c0_58] : memref<16x32xf32, #tpu.memory_space<vmem>>, vector<8x8xf32>
    tpu.vector_store %arg12[%c8_57, %c0_58], %139 {strides = array<i32>} : memref<16x32xf32, #tpu.memory_space<vmem>>, vector<8x8xf32>,
    %141 = vector.extract_strided_slice %12 {offsets = [8, 8], sizes = [8, 8], strides = [1, 1]} : vector<16x32xf32> to vector<8x8xf32>
    %142 = vector.extract_strided_slice %19 {offsets = [8, 0], sizes = [8, 8], strides = [1, 1]} : vector<16x16xf32> to vector<8x8xf32>
    %143 = vector.extract_strided_slice %5 {offsets = [8, 0], sizes = [8, 8], strides = [1, 1]} : vector<16x16xf32> to vector<8x8xf32>
    %cst_59 = arith.constant dense<0.000000e+00> : vector<8x8xf32>
    %144 = tpu.matmul %141, %142, %cst_59 {dimension_numbers = #tpu.dot_dimension_numbers<[1], [1], [0], [0], [0, 0, 1, 0], [], []>} : vector<8x8xf32>, vector<8x8xf32>, vector<8x8xf32> -> vector<8x8xf32>
    %cst_60 = arith.constant 0.353553385 : f32
    %145 = vector.broadcast %cst_60 : f32 to vector<8x8xf32>
    %146 = arith.mulf %144, %145 : vector<8x8xf32>
    %cst_61 = arith.constant -1.000000e+30 : f32
    %147 = vector.broadcast %cst_61 : f32 to vector<8x8xf32>
    %148 = arith.select %40, %146, %147 : vector<8x8xi1>, vector<8x8xf32>
    %cst_62 = arith.constant dense<0xFF800000> : vector<8xf32>
    %149 = vector.multi_reduction <maximumf>, %148, %cst_62 [1] : vector<8x8xf32> to vector<8xf32>
    %150 = vector.shape_cast %149 : vector<8xf32> to vector<8x1xf32>
    %151 = vector.broadcast %150 : vector<8x1xf32> to vector<8x8xf32>
    %152 = arith.subf %148, %151 : vector<8x8xf32>
    %153 = math.exp %152 : vector<8x8xf32>
    %cst_63 = arith.constant dense<0.000000e+00> : vector<8xf32>
    %154 = vector.multi_reduction <add>, %153, %cst_63 [1] : vector<8x8xf32> to vector<8xf32>
    %155 = vector.shape_cast %154 : vector<8xf32> to vector<8x1xf32>
    %156 = tpu.reciprocal %155 {approx = true} : vector<8x1xf32> -> vector<8x1xf32>
    %157 = vector.broadcast %156 : vector<8x1xf32> to vector<8x8xf32>
    %158 = arith.mulf %153, %157 : vector<8x8xf32>
    %cst_64 = arith.constant dense<0.000000e+00> : vector<8x8xf32>
    %159 = tpu.matmul %158, %143, %cst_64 {dimension_numbers = #tpu.dot_dimension_numbers<[1], [0], [0], [1], [0, 0, 1, 1], [], []>} : vector<8x8xf32>, vector<8x8xf32>, vector<8x8xf32> -> vector<8x8xf32>
    %c8_65 = arith.constant 8 : index
    %c8_66 = arith.constant 8 : index
    %160 = vector.load %arg12[%c8_65, %c8_66] : memref<16x32xf32, #tpu.memory_space<vmem>>, vector<8x8xf32>
    tpu.vector_store %arg12[%c8_65, %c8_66], %159 {strides = array<i32>} : memref<16x32xf32, #tpu.memory_space<vmem>>, vector<8x8xf32>,
    %161 = vector.extract_strided_slice %12 {offsets = [8, 16], sizes = [8, 8], strides = [1, 1]} : vector<16x32xf32> to vector<8x8xf32>
    %162 = vector.extract_strided_slice %19 {offsets = [8, 8], sizes = [8, 8], strides = [1, 1]} : vector<16x16xf32> to vector<8x8xf32>
    %163 = vector.extract_strided_slice %5 {offsets = [8, 8], sizes = [8, 8], strides = [1, 1]} : vector<16x16xf32> to vector<8x8xf32>
    %cst_67 = arith.constant dense<0.000000e+00> : vector<8x8xf32>
    %164 = tpu.matmul %161, %162, %cst_67 {dimension_numbers = #tpu.dot_dimension_numbers<[1], [1], [0], [0], [0, 0, 1, 0], [], []>} : vector<8x8xf32>, vector<8x8xf32>, vector<8x8xf32> -> vector<8x8xf32>
    %cst_68 = arith.constant 0.353553385 : f32
    %165 = vector.broadcast %cst_68 : f32 to vector<8x8xf32>
    %166 = arith.mulf %164, %165 : vector<8x8xf32>
    %cst_69 = arith.constant -1.000000e+30 : f32
    %167 = vector.broadcast %cst_69 : f32 to vector<8x8xf32>
    %168 = arith.select %40, %166, %167 : vector<8x8xi1>, vector<8x8xf32>
    %cst_70 = arith.constant dense<0xFF800000> : vector<8xf32>
    %169 = vector.multi_reduction <maximumf>, %168, %cst_70 [1] : vector<8x8xf32> to vector<8xf32>
    %170 = vector.shape_cast %169 : vector<8xf32> to vector<8x1xf32>
    %171 = vector.broadcast %170 : vector<8x1xf32> to vector<8x8xf32>
    %172 = arith.subf %168, %171 : vector<8x8xf32>
    %173 = math.exp %172 : vector<8x8xf32>
    %cst_71 = arith.constant dense<0.000000e+00> : vector<8xf32>
    %174 = vector.multi_reduction <add>, %173, %cst_71 [1] : vector<8x8xf32> to vector<8xf32>
    %175 = vector.shape_cast %174 : vector<8xf32> to vector<8x1xf32>
    %176 = tpu.reciprocal %175 {approx = true} : vector<8x1xf32> -> vector<8x1xf32>
    %177 = vector.broadcast %176 : vector<8x1xf32> to vector<8x8xf32>
    %178 = arith.mulf %173, %177 : vector<8x8xf32>
    %cst_72 = arith.constant dense<0.000000e+00> : vector<8x8xf32>
    %179 = tpu.matmul %178, %163, %cst_72 {dimension_numbers = #tpu.dot_dimension_numbers<[1], [0], [0], [1], [0, 0, 1, 1], [], []>} : vector<8x8xf32>, vector<8x8xf32>, vector<8x8xf32> -> vector<8x8xf32>
    %c8_73 = arith.constant 8 : index
    %c16_74 = arith.constant 16 : index
    %180 = vector.load %arg12[%c8_73, %c16_74] : memref<16x32xf32, #tpu.memory_space<vmem>>, vector<8x8xf32>
    tpu.vector_store %arg12[%c8_73, %c16_74], %179 {strides = array<i32>} : memref<16x32xf32, #tpu.memory_space<vmem>>, vector<8x8xf32>,
    %181 = vector.extract_strided_slice %12 {offsets = [8, 24], sizes = [8, 8], strides = [1, 1]} : vector<16x32xf32> to vector<8x8xf32>
    %182 = vector.extract_strided_slice %19 {offsets = [8, 8], sizes = [8, 8], strides = [1, 1]} : vector<16x16xf32> to vector<8x8xf32>
    %183 = vector.extract_strided_slice %5 {offsets = [8, 8], sizes = [8, 8], strides = [1, 1]} : vector<16x16xf32> to vector<8x8xf32>
    %cst_75 = arith.constant dense<0.000000e+00> : vector<8x8xf32>
    %184 = tpu.matmul %181, %182, %cst_75 {dimension_numbers = #tpu.dot_dimension_numbers<[1], [1], [0], [0], [0, 0, 1, 0], [], []>} : vector<8x8xf32>, vector<8x8xf32>, vector<8x8xf32> -> vector<8x8xf32>
    %cst_76 = arith.constant 0.353553385 : f32
    %185 = vector.broadcast %cst_76 : f32 to vector<8x8xf32>
    %186 = arith.mulf %184, %185 : vector<8x8xf32>
    %cst_77 = arith.constant -1.000000e+30 : f32
    %187 = vector.broadcast %cst_77 : f32 to vector<8x8xf32>
    %188 = arith.select %40, %186, %187 : vector<8x8xi1>, vector<8x8xf32>
    %cst_78 = arith.constant dense<0xFF800000> : vector<8xf32>
    %189 = vector.multi_reduction <maximumf>, %188, %cst_78 [1] : vector<8x8xf32> to vector<8xf32>
    %190 = vector.shape_cast %189 : vector<8xf32> to vector<8x1xf32>
    %191 = vector.broadcast %190 : vector<8x1xf32> to vector<8x8xf32>
    %192 = arith.subf %188, %191 : vector<8x8xf32>
    %193 = math.exp %192 : vector<8x8xf32>
    %cst_79 = arith.constant dense<0.000000e+00> : vector<8xf32>
    %194 = vector.multi_reduction <add>, %193, %cst_79 [1] : vector<8x8xf32> to vector<8xf32>
    %195 = vector.shape_cast %194 : vector<8xf32> to vector<8x1xf32>
    %196 = tpu.reciprocal %195 {approx = true} : vector<8x1xf32> -> vector<8x1xf32>
    %197 = vector.broadcast %196 : vector<8x1xf32> to vector<8x8xf32>
    %198 = arith.mulf %193, %197 : vector<8x8xf32>
    %cst_80 = arith.constant dense<0.000000e+00> : vector<8x8xf32>
    %199 = tpu.matmul %198, %183, %cst_80 {dimension_numbers = #tpu.dot_dimension_numbers<[1], [0], [0], [1], [0, 0, 1, 1], [], []>} : vector<8x8xf32>, vector<8x8xf32>, vector<8x8xf32> -> vector<8x8xf32>
    %c8_81 = arith.constant 8 : index
    %c24_82 = arith.constant 24 : index
    %200 = vector.load %arg12[%c8_81, %c24_82] : memref<16x32xf32, #tpu.memory_space<vmem>>, vector<8x8xf32>
    tpu.vector_store %arg12[%c8_81, %c24_82], %199 {strides = array<i32>} : memref<16x32xf32, #tpu.memory_space<vmem>>, vector<8x8xf32>,
    %c0_83 = arith.constant 0 : index
    %c0_84 = arith.constant 0 : index
    %201 = vector.load %arg12[%c0_83, %c0_84] : memref<16x32xf32, #tpu.memory_space<vmem>>, vector<16x32xf32>
    %c0_85 = arith.constant 0 : index
    %c0_86 = arith.constant 0 : index
    %202 = vector.load %arg3[%c0_85, %c0_86] : memref<32x32xf32, #tpu.memory_space<vmem>>, vector<32x32xf32>
    %cst_87 = arith.constant dense<0.000000e+00> : vector<16x32xf32>
    %203 = tpu.matmul %201, %202, %cst_87 {dimension_numbers = #tpu.dot_dimension_numbers<[1], [0], [0], [1], [0, 0, 1, 1], [], []>} : vector<16x32xf32>, vector<32x32xf32>, vector<16x32xf32> -> vector<16x32xf32>
    %c0_88 = arith.constant 0 : index
    %c0_89 = arith.constant 0 : index
    %204 = vector.load %arg9[%c0_88, %c0_89] : memref<16x32xf32, #tpu.memory_space<vmem>>, vector<16x32xf32>
    tpu.vector_store %arg9[%c0_88, %c0_89], %203 {strides = array<i32>} : memref<16x32xf32, #tpu.memory_space<vmem>>, vector<16x32xf32>,
    return
  }
  func.func @transform_0(%arg0: i32) -> (i32, i32) {
    %c0_i32 = arith.constant 0 : i32
    %c0_i32_0 = arith.constant 0 : i32
    %c0_i32_1 = arith.constant 0 : i32
    return %c0_i32, %c0_i32_0 : i32, i32
  }
  func.func @transform_1(%arg0: i32) -> (i32, i32) {
    %c0_i32 = arith.constant 0 : i32
    %c0_i32_0 = arith.constant 0 : i32
    %c0_i32_1 = arith.constant 0 : i32
    return %c0_i32, %c0_i32_0 : i32, i32
  }
  func.func @transform_2(%arg0: i32) -> (i32, i32) {
    %c0_i32 = arith.constant 0 : i32
    %c0_i32_0 = arith.constant 0 : i32
    %c0_i32_1 = arith.constant 0 : i32
    return %c0_i32, %c0_i32_0 : i32, i32
  }
  func.func @transform_3(%arg0: i32) -> (i32, i32) {
    %c0_i32 = arith.constant 0 : i32
    %c0_i32_0 = arith.constant 0 : i32
    %c0_i32_1 = arith.constant 0 : i32
    return %c0_i32, %c0_i32_0 : i32, i32
  }
  func.func @transform_4(%arg0: i32) -> (i32, i32) {
    %c0_i32 = arith.constant 0 : i32
    %c0_i32_0 = arith.constant 0 : i32
    %c0_i32_1 = arith.constant 0 : i32
    return %c0_i32, %c0_i32_0 : i32, i32
  }
  func.func @transform_5(%arg0: i32) -> (i32, i32) {
    %c0_i32 = arith.constant 0 : i32
    %c0_i32_0 = arith.constant 0 : i32
    %c0_i32_1 = arith.constant 0 : i32
    return %c0_i32, %c0_i32_0 : i32, i32
  }
  func.func @transform_6(%arg0: i32) -> (i32, i32, i32) {
    %c0_i32 = arith.constant 0 : i32
    %c0_i32_0 = arith.constant 0 : i32
    %c0_i32_1 = arith.constant 0 : i32
    %c0_i32_2 = arith.constant 0 : i32
    return %c0_i32, %c0_i32_0, %c0_i32_1 : i32, i32, i32
  }
  func.func @transform_7(%arg0: i32) -> (i32, i32, i32) {
    %c0_i32 = arith.constant 0 : i32
    %c0_i32_0 = arith.constant 0 : i32
    %c0_i32_1 = arith.constant 0 : i32
    %c0_i32_2 = arith.constant 0 : i32
    return %c0_i32, %c0_i32_0, %c0_i32_1 : i32, i32, i32
  }
  func.func @transform_8(%arg0: i32) -> (i32, i32) {
    %c0_i32 = arith.constant 0 : i32
    %c0_i32_0 = arith.constant 0 : i32
    %c0_i32_1 = arith.constant 0 : i32
    return %c0_i32, %c0_i32_0 : i32, i32
  }
  func.func @transform_9(%arg0: i32) -> (i32, i32, i32) {
    %c0_i32 = arith.constant 0 : i32
    %c0_i32_0 = arith.constant 0 : i32
    %c0_i32_1 = arith.constant 0 : i32
    %c0_i32_2 = arith.constant 0 : i32
    return %c0_i32, %c0_i32_0, %c0_i32_1 : i32, i32, i32
  }
  func.func @transform_10(%arg0: i32) -> (i32, i32, i32) {
    %c0_i32 = arith.constant 0 : i32
    %c0_i32_0 = arith.constant 0 : i32
    %c0_i32_1 = arith.constant 0 : i32
    %c0_i32_2 = arith.constant 0 : i32
    return %c0_i32, %c0_i32_0, %c0_i32_1 : i32, i32, i32
  }
}

</mosaic_0001>

<bundles_post_ra>
// kernel: mha_forward.1
= control target key start
LH: loop header
LB: loop body
LE: loop exit
PB: predicated region body
PF: predicated region fallthrough
CT: control target
= control target key end

     0   :  { %16 = vsyncpa [#allocation4], 0  ;;  %s1579_s0 = inlined_call_operand.hbm [shape: f32[16,32], index: 0, kind: input, shape index: {}]   ;;  %s1580_s1 = inlined_call_operand.hbm [shape: f32[32,64], index: 1, kind: input, shape index: {}]   ;;  %s1581_s2 = inlined_call_operand.hbm [shape: f32[32,32], index: 2, kind: input, shape index: {}]   ;;  %s1582_s3 = inlined_call_operand.hbm [shape: f32[16,32], index: 3, kind: input, shape index: {}]   ;;  %s1583_s4 = inlined_call_operand.hbm [shape: f32[16,32], index: 4, kind: input, shape index: {}]   ;;  %s1584_s5 = inlined_call_operand.hbm [shape: f32[32,32], index: 5, kind: input, shape index: {}]   ;;  %s1585_s6 = inlined_call_operand.hbm [shape: f32[4,16,16], index: 6, kind: input, shape index: {}, may-alias: {6,9}]   ;;  %s1586_s7 = inlined_call_operand.hbm [shape: f32[4,16,16], index: 7, kind: input, shape index: {}, may-alias: {7,10}]   ;;  %s1587_s8 = inlined_call_operand.hbm [shape: f32[16,32], index: 8, kind: output, shape index: {0}]   ;;  %s1588_s9 = inlined_call_operand.hbm [shape: f32[4,16,16], index: 9, kind: output, shape index: {1}, may-alias: {6,9}]   ;;  %s1589_s10 = inlined_call_operand.hbm [shape: f32[4,16,16], index: 10, kind: output, shape index: {2}, may-alias: {7,10}]  }
   0x1   :  { %17 = vsyncpa [#allocation7], 0 }
   0x2   :  { %18 = vsyncpa [#allocation10], 0 }
   0x3   :  { %19 = vsyncpa [#allocation13], 0 }
   0x4   :  { %20 = vsyncpa [#allocation16], 0 }
   0x5   :  { %21 = vsyncpa [#allocation5], 0 }
   0x6   :  { %22 = vsyncpa [#allocation19], 0  ;;  %s40_s15 = sshll.u32 %s1580_s1, 4  ;;  %s1314_s16 = smov [#allocation6]   ;;  %s41_s15 = int_to_ptr.hbm [resolvable:$true] %s40_s15 }
   0x7   :  { %s42_s17 = sshll.u32 %s1314_s16, 4  ;;  %s66_s20 = sshll.u32 %s1582_s3, 4  ;;  %s43_s17 = int_to_ptr.vmem [resolvable:$true] %s42_s17  ;;  %s67_s20 = int_to_ptr.hbm [resolvable:$true] %s66_s20 }
   0x8   :  { %s1315_s21 = smov 128   ;;  %s1316_s22 = smov 8  }
   0x9   :  { %48 = dma.hbm_to_vmem [thread:$0]  %s41_s15, 512, %s43_s17, [#allocation7], %s1315_s21, %s1315_s21, %s1316_s22  }
   0xa   :  { %s1317_s23 = smov [#allocation9]   ;;  %s92_s1 = sshll.u32 %s1584_s5, 4  ;;  %s93_s1 = int_to_ptr.hbm [resolvable:$true] %s92_s1 }
   0xb   :  { %s68_s24 = sshll.u32 %s1317_s23, 4  ;;  %s27_s28 = sshll.u32 %s1579_s0, 4  ;;  %s69_s24 = int_to_ptr.vmem [resolvable:$true] %s68_s24  ;;  %s28_s28 = int_to_ptr.hbm [resolvable:$true] %s27_s28 }
   0xc   :  { %74 = dma.hbm_to_vmem [thread:$0]  %s67_s20, 256, %s69_s24, [#allocation10], %s1315_s21, %s1315_s21, %s1316_s22  }
   0xd   :  { %s1318_s29 = smov [#allocation12]   ;;  %s1319_s11 = smov [#allocation3]  }
   0xe   :  { %s94_s30 = sshll.u32 %s1318_s29, 4  ;;  %s29_s5 = sshll.u32 %s1319_s11, 4  ;;  %s95_s30 = int_to_ptr.vmem [resolvable:$true] %s94_s30  ;;  %s30_s5 = int_to_ptr.vmem [resolvable:$true] %s29_s5 }
   0xf   :  { %100 = dma.hbm_to_vmem [thread:$0]  %s93_s1, 512, %s95_s30, [#allocation13], %s1315_s21, %s1315_s21, %s1316_s22  }
  0x10   :  { %s53_s14 = sshll.u32 %s1581_s2, 4  ;;  %s79_s16 = sshll.u32 %s1583_s4, 4  ;;  %s54_s14 = int_to_ptr.hbm [resolvable:$true] %s53_s14  ;;  %s80_s16 = int_to_ptr.hbm [resolvable:$true] %s79_s16 }
  0x11   :  { %35 = dma.hbm_to_vmem [thread:$0]  %s28_s28, 256, %s30_s5, [#allocation4], %s1315_s21, %s1315_s21, %s1316_s22  }
  0x12   :  { %s1320_s17 = smov [#allocation8]   ;;  %s1321_s19 = smov [#allocation11]  }
  0x13   :  { %s55_s18 = sshll.u32 %s1320_s17, 4  ;;  %s81_s2 = sshll.u32 %s1321_s19, 4  ;;  %s56_s18 = int_to_ptr.vmem [resolvable:$true] %s55_s18  ;;  %s82_s2 = int_to_ptr.vmem [resolvable:$true] %s81_s2 }
  0x14   :  { %61 = dma.hbm_to_vmem [thread:$0]  %s54_s14, 512, %s56_s18, [#allocation7], %s1315_s21, %s1315_s21, %s1316_s22  }
  0x15   :  { %s105_s24 = sshll.u32 %s1585_s6, 4  ;;  %s118_s26 = sshll.u32 %s1586_s7, 4  ;;  %s106_s24 = int_to_ptr.hbm [resolvable:$true] %s105_s24  ;;  %s119_s26 = int_to_ptr.hbm [resolvable:$true] %s118_s26 }
  0x16   :  { %87 = dma.hbm_to_vmem [thread:$0]  %s80_s16, 256, %s82_s2, [#allocation10], %s1315_s21, %s1315_s21, %s1316_s22  }
  0x17   :  { %s1322_s1 = smov [#allocation14]   ;;  %s1323_s27 = smov [#allocation15]  }
  0x18   :  { %s107_s3 = sshll.u32 %s1322_s1, 4  ;;  %s120_s6 = sshll.u32 %s1323_s27, 4  ;;  %s108_s3 = int_to_ptr.vmem [resolvable:$true] %s107_s3  ;;  %s121_s6 = int_to_ptr.vmem [resolvable:$true] %s120_s6 }
  0x19   :  { %113 = dma.hbm_to_vmem [thread:$0]  %s106_s24, 1024, %s108_s3, [#allocation13], %s1315_s21, %s1315_s21, %s1316_s22  }
  0x1a   :  { %126 = dma.hbm_to_vmem [thread:$0]  %s119_s26, 1024, %s121_s6, [#allocation16], %s1315_s21, %s1315_s21, %s1316_s22  }
  0x1b   :  { %1300 = dma.done.wait [#allocation4], 256  }
  0x1c   :  { %1301 = vsyncadd [#allocation4], 4294967040 }
  0x1d   :  { %1302 = dma.done.wait [#allocation7], 1024  }
  0x1e   :  { %1303 = vsyncadd [#allocation7], 4294966272 }
  0x1f   :  { %1304 = dma.done.wait [#allocation10], 512  }
  0x20   :  { %1305 = vsyncadd [#allocation10], 4294966784 }
  0x21   :  { %1306 = dma.done.wait [#allocation13], 1536  }
  0x22   :  { %1307 = vsyncadd [#allocation13], 4294965760 }
  0x23   :  { %1308 = dma.done.wait [#allocation16], 1024  }
  0x24   :  { %1309 = vsyncadd [#allocation16], 4294966272  ;;  %v164_v0 = vld [vmem:[#allocation6 + $0x18] sm:$0xff]  ;;  %v163_v1 = vld [vmem:[#allocation6 + $0x10] sm:$0xff]  ;;  %s1324_s7 = smov 32   ;;  %vm165_vm0 = vcmask 261120   ;;  %v312_v48 = vlaneseq }
  0x25   :  { %184 = vmatpush.msra.mxu0 %v164_v0  ;;  %976 = vmatpush.msra.mxu1 %v164_v0  ;;  %v162_v2 = vld [vmem:[#allocation6 + $0x8] sm:$0xff]  ;;  %v195_v3 = vld [vmem:[#allocation9] sm:$0xff]  ;;  %v159_v6 = vld [vmem:[#allocation3] sm:$0xff]  ;;  %s1325_s28 = smov 96   ;;  %vm242_vm1 = vcmask 130048   ;;  %s1326_s29 = smov 120  }
  0x26   :  { %v1441_v4 = vld [vmem:[#allocation9 + $0x8] sm:$0xff]  ;;  %v161_v5 = vld [vmem:[#allocation6] sm:$0xff]  ;;  %272 = vrot.lane.b32.xlu1 %v195_v3, %s1324_s7  ;;  %v160_v7 = vld [vmem:[#allocation3 + $0x8] sm:$0xff]  ;;  %s1327_s30 = smov 88   ;;  %s1328_s11 = smov 104   ;;  %vm317_vm2 = vcmask 64512  }
  0x27   :  { %185 = vmatpush.msra.mxu0 %v163_v1  ;;  %977 = vmatpush.msra.mxu1 %v163_v1  ;;  %v200_v8 = vld [vmem:[#allocation12 + $0x8] sm:$0xff]  ;;  %v202_v9 = vld [vmem:[#allocation12 + $0x18] sm:$0xff]  ;;  %v201_v10 = vld [vmem:[#allocation12 + $0x10] sm:$0xff]  ;;  %s1329_s5 = smov 112   ;;  %v313_v49 = vshrl.u32 %v312_v48, 7  ;;  %v315_v50 = vand.u32 127, %v312_v48 }
  0x28   :  { %274 = vrot.lane.b32.xlu2 %v1441_v4, %s1324_s7  ;;  %261 = vmatpush.msra.mxu2 %v200_v8  ;;  %v199_v11 = vld [vmem:[#allocation12] sm:$0xff]  ;;  %v197_v16 = vld [vmem:[#allocation11] sm:$0xff]  ;;  %v198_v22 = vld [vmem:[#allocation11 + $0x8] sm:$0xff]  ;;  %s1330_s12 = smov 80   ;;  %s1331_s13 = smov 72   ;;  %vm444_vm4 = vcmask 130112  }
  0x29   :  { %186 = vmatpush.msra.mxu0 %v162_v2  ;;  %978 = vmatpush.msra.mxu1 %v162_v2  ;;  %vm1489_vm3 = vcmp.le.s32.totalorder %v315_v50, %v313_v49  ;;  %s1332_s14 = smov 16   ;;  %s1333_s0 = smov 24   ;;  %vm517_vm5 = vcmask 195712   ;;  %vm583_vm6 = vcmask 261312  }
  0x2a   :  { %262 = vmatpush.msra.mxu2 %v199_v11  ;;  %s1334_s15 = smov [#allocation18]   ;;  %s905_s19 = sshll.u32 %s1588_s9, 4  ;;  %s906_s19 = int_to_ptr.hbm [resolvable:$true] %s905_s19 }
  0x2b   :  { %187 = vmatpush.msra.mxu0 %v161_v5  ;;  %979 = vmatpush.msra.mxu1 %v161_v5  ;;  %s903_s16 = sshll.u32 %s1334_s15, 4  ;;  %s1335_s2 = smov 256   ;;  %s904_s16 = int_to_ptr.vmem [resolvable:$true] %s903_s16 }
  0x2c   :  { %944 = vmatmul.msk.f32.vlgmr.msra.gmra.mxu0 %vm165_vm0, %v159_v6  ;;  %945 = vmatmul.msk.f32.vlgmr.msra.gmra.mxu1 %vm165_vm0, %v160_v7  ;;  %s918_s24 = sshll.u32 %s1589_s10, 4  ;;  %s1336_s4 = smov [#allocation20]   ;;  %s919_s24 = int_to_ptr.hbm [resolvable:$true] %s918_s24 }
  0x2d   :  { %221 = vmatpush.msrb.mxu1 %v202_v9  ;;  %s916_s25 = sshll.u32 %s1336_s4, 4  ;;  %s1337_s9 = smov [#allocation17]   ;;  %s917_s25 = int_to_ptr.vmem [resolvable:$true] %s916_s25 }
  0x2e   :  { %s890_s26 = sshll.u32 %s1337_s9, 4  ;;  %s892_s27 = sshll.u32 %s1587_s8, 4  ;;  %s891_s26 = int_to_ptr.vmem [resolvable:$true] %s890_s26  ;;  %s893_s27 = int_to_ptr.hbm [resolvable:$true] %s892_s27 }
  0x2f   :  { %222 = vmatpush.msrb.mxu1 %v201_v10 }
  0x31   :  { %223 = vmatpush.msrb.mxu1 %v200_v8 }
  0x33   :  { %224 = vmatpush.msrb.mxu1 %v199_v11 }
  0x82   :  { %v275_v26 = vpop.permute.xlu2 %274 }
  0x98   :  { %v273_v30 = vpop.permute.xlu1 %272 }
  0xa9   :  { %v1448_v12 = vpop.f32.mrf.mxu0  ;;  %v1454_v13 = vpop.f32.mrf.mxu1 }
  0xaa   :  { %238 = vrot.lane.b32.xlu0 %v1448_v12, %s1325_s28  ;;  %946 = vmatmul.msk.f32.vlgmr.msrb.gmra.mxu1 %vm165_vm0, %v1448_v12  ;;  %v232_v21 = vmul.f32 %v195_v3, %v1448_v12  ;;  %v279_v27 = vmul.f32 %v275_v26, %v1454_v13  ;;  %v278_v31 = vmul.f32 %v273_v30, %v1448_v12 }
  0xab   :  { %v233_v36 = vmul.f32 %v1441_v4, %v1454_v13 }
  0xb2   :  { %240 = vrot.lane.b32.xlu0 %v1454_v13, %s1325_s28  ;;  %947 = vmatmul.msk.f32.gmra.mxu1 %vm165_vm0, %v1454_v13 }
 0x11c   :  { %v239_v14 = vpop.permute.xlu0 %238 }
 0x11d   :  { %948 = vmatmul.msk.f32.vlgmr.msra.gmra.mxu2 %vm242_vm1, %v239_v14 }
 0x124   :  { %v241_v15 = vpop.permute.xlu0 %240 }
 0x125   :  { %949 = vmatmul.msk.f32.gmra.mxu2 %vm242_vm1, %v241_v15 }
 0x127   :  { %v226_v19 = vpop.f32.mrf.mxu1 }
 0x128   :  { %v234_v20 = vmul.f32 %v226_v19, %v197_v16 }
 0x12a   :  { %v236_v24 = vadd.f32 %v234_v20, %v232_v21 }
 0x12f   :  { %v229_v34 = vpop.f32.mrf.mxu1 }
 0x130   :  { %v235_v35 = vmul.f32 %v229_v34, %v198_v22 }
 0x132   :  { %v237_v37 = vadd.f32 %v235_v35, %v233_v36 }
 0x1a0   :  { %v264_v17 = vpop.f32.mrf.mxu2 }
 0x1a1   :  { %v280_v18 = vmul.f32 %v264_v17, %v197_v16 }
 0x1a3   :  { %284 = vrot.lane.b32.xlu1 %v280_v18, %s1324_s7 }
 0x1a8   :  { %v267_v23 = vpop.f32.mrf.mxu2 }
 0x1a9   :  { %v281_v25 = vmul.f32 %v267_v23, %v198_v22 }
 0x1ab   :  { %286 = vrot.lane.b32.xlu2 %v281_v25, %s1324_s7  ;;  %380 = vrot.lane.b32.xlu1 %v236_v24, %s1326_s29 }
 0x205   :  { %v287_v28 = vpop.permute.xlu2 %286 }
 0x206   :  { %v291_v29 = vadd.f32 %v287_v28, %v279_v27 }
 0x208   :  { %302 = vrot.lane.b32.xlu1 %v291_v29, %s1325_s28 }
 0x210   :  { %714 = vrot.lane.b32.xlu1 %v291_v29, %s1327_s30 }
 0x215   :  { %v285_v32 = vpop.permute.xlu1 %284 }
 0x216   :  { %v290_v33 = vadd.f32 %v285_v32, %v278_v31 }
 0x218   :  { %448 = vrot.lane.b32.xlu2 %v290_v33, %s1327_s30  ;;  %293 = vrot.lane.b32.xlu0 %v290_v33, %s1325_s28 }
 0x21d   :  { %v381_v38 = vpop.permute.xlu1 %380 }
 0x220   :  { %519 = vrot.lane.b32.xlu0 %v236_v24, %s1328_s11  ;;  %647 = vrot.lane.b32.xlu2 %v237_v37, %s1326_s29 }
 0x228   :  { %446 = vrot.lane.b32.xlu0 %v236_v24, %s1329_s5  ;;  %784 = vrot.lane.b32.xlu2 %v237_v37, %s1328_s11 }
 0x230   :  { %712 = vrot.lane.b32.xlu0 %v237_v37, %s1329_s5 }
 0x272   :  { %v449_v39 = vpop.permute.xlu2 %448 }
 0x273   :  { %956 = vmatpush.xpose.msk.msrb.mxu0 %vm317_vm2, %v449_v39 }
 0x27a   :  { %v303_v40 = vpop.permute.xlu1 %302  ;;  %v648_v45 = vpop.permute.xlu2 %647 }
 0x27b   :  { %306 = vst.msk [vmem:[#allocation18 + $0x8] sm:$0xff] %vm242_vm1, %v303_v40  ;;  %962 = vmatpush.xpose.msk.msra.mxu0 %vm317_vm2, %v303_v40 }
 0x282   :  { %v715_v43 = vpop.permute.xlu1 %714  ;;  %v785_v46 = vpop.permute.xlu2 %784 }
 0x28a   :  { %v294_v41 = vpop.permute.xlu0 %293 }
 0x28b   :  { %296 = vst.msk [vmem:[#allocation18] sm:$0xff] %vm242_vm1, %v294_v41  ;;  %950 = vmatpush.xpose.msk.msra.mxu3 %vm317_vm2, %v294_v41  ;;  %953 = vmatpush.xpose.msk.msrb.mxu2 %vm317_vm2, %v294_v41 }
 0x28c   :  { %911 = dma.vmem_to_hbm [thread:$0]  %s904_s16, 256, %s906_s19, [#allocation19], %s1315_s21, %s1335_s2, %s1316_s22  }
 0x28e   :  { %951 = vmatmul.msk.f32.vlgmr.msra.gmra.mxu3 %vm317_vm2, %v236_v24  ;;  %954 = vmatmul.msk.f32.vlgmr.msrb.gmra.mxu2 %vm317_vm2, %v381_v38 }
 0x28f   :  { %959 = vmatpush.xpose.msk.msra.mxu2 %vm317_vm2, %v449_v39 }
 0x292   :  { %v520_v42 = vpop.permute.xlu0 %519 }
 0x293   :  { %965 = vmatpush.xpose.msk.msrb.mxu2 %vm317_vm2, %v303_v40 }
 0x296   :  { %960 = vmatmul.msk.f32.vlgmr.msra.gmra.mxu2 %vm317_vm2, %v520_v42 }
 0x297   :  { %971 = vmatpush.xpose.msk.msra.mxu2 %vm317_vm2, %v715_v43 }
 0x29a   :  { %v447_v44 = vpop.permute.xlu0 %446 }
 0x29b   :  { %957 = vmatmul.msk.f32.vlgmr.msrb.gmra.mxu0 %vm317_vm2, %v447_v44 }
 0x29c   :  { %968 = vmatpush.xpose.msk.msrb.mxu0 %vm317_vm2, %v715_v43 }
 0x29e   :  { %966 = vmatmul.msk.f32.vlgmr.msrb.gmra.mxu2 %vm317_vm2, %v648_v45 }
 0x2a2   :  { %v713_v47 = vpop.permute.xlu0 %712 }
 0x2a3   :  { %963 = vmatmul.msk.f32.vlgmr.msra.gmra.mxu0 %vm317_vm2, %v237_v37 }
 0x2a6   :  { %972 = vmatmul.msk.f32.vlgmr.msra.gmra.mxu2 %vm317_vm2, %v785_v46 }
 0x2ab   :  { %969 = vmatmul.msk.f32.vlgmr.msrb.gmra.mxu0 %vm317_vm2, %v713_v47 }
 0x311   :  { %v340_v51 = vpop.f32.mrf.mxu3  ;;  %v401_v52 = vpop.f32.mrf.mxu2 }
 0x312   :  { %v343_v54 = vmul.f32 0.35355338, %v340_v51  ;;  %v404_v0 = vmul.f32 0.35355338, %v401_v52 }
 0x314   :  { %v344_v55 = vsel %vm1489_vm3, %v343_v54, -1e+30  ;;  %v405_v4 = vsel %vm1489_vm3, %v404_v0, -1e+30 }
 0x315   :  { %v345_v56 = vsel %vm317_vm2, %v344_v55, -inf  ;;  %v406_v5 = vsel %vm317_vm2, %v405_v4, -inf }
 0x316   :  { %346 = vmax.xlane.f32.xlu1 %v345_v56 }
 0x318   :  { %v471_v57 = vpop.f32.mrf.mxu0 }
 0x319   :  { %v474_v58 = vmul.f32 0.35355338, %v471_v57  ;;  %v540_v59 = vpop.f32.mrf.mxu2 }
 0x31a   :  { %v543_v60 = vmul.f32 0.35355338, %v540_v59 }
 0x31b   :  { %v475_v61 = vsel %vm1489_vm3, %v474_v58, -1e+30 }
 0x31c   :  { %v476_v62 = vsel %vm317_vm2, %v475_v61, -inf  ;;  %v544_v63 = vsel %vm1489_vm3, %v543_v60, -1e+30 }
 0x31d   :  { %477 = vmax.xlane.f32.xlu2 %v476_v62  ;;  %v545_v1 = vsel %vm317_vm2, %v544_v63, -inf }
 0x31e   :  { %546 = vmax.xlane.f32.xlu0 %v545_v1 }
 0x320   :  { %v607_v2 = vpop.f32.mrf.mxu0 }
 0x321   :  { %v668_v3 = vpop.f32.mrf.mxu2  ;;  %v610_v6 = vmul.f32 0.35355338, %v607_v2 }
 0x322   :  { %v671_v18 = vmul.f32 0.35355338, %v668_v3 }
 0x323   :  { %v611_v10 = vsel %vm1489_vm3, %v610_v6, -1e+30 }
 0x324   :  { %v612_v16 = vsel %vm317_vm2, %v611_v10, -inf  ;;  %v672_v20 = vsel %vm1489_vm3, %v671_v18, -1e+30 }
 0x325   :  { %407 = vmax.xlane.f32.xlu2 %v406_v5  ;;  %v673_v21 = vsel %vm317_vm2, %v672_v20, -inf }
 0x328   :  { %v737_v7 = vpop.f32.mrf.mxu0 }
 0x329   :  { %v740_v8 = vmul.f32 0.35355338, %v737_v7  ;;  %v805_v9 = vpop.f32.mrf.mxu2 }
 0x32a   :  { %v808_v11 = vmul.f32 0.35355338, %v805_v9 }
 0x32b   :  { %v1509_v14 = vsel %vm1489_vm3, %v740_v8, -1e+30 }
 0x32c   :  { %v742_v15 = vsel %vm317_vm2, %v1509_v14, -inf  ;;  %v809_v17 = vsel %vm1489_vm3, %v808_v11, -1e+30 }
 0x32d   :  { %743 = vmax.xlane.f32.xlu1 %v742_v15  ;;  %613 = vmax.xlane.f32.xlu2 %v612_v16  ;;  %v810_v19 = vsel %vm317_vm2, %v809_v17, -inf }
 0x32e   :  { %811 = vmax.xlane.f32.xlu0 %v810_v19 }
 0x335   :  { %674 = vmax.xlane.f32.xlu1 %v673_v21 }
 0x34e   :  { %297 = vrot.lane.b32.xlu1 %v1448_v12, %s1330_s12 }
 0x389   :  { %v347_v22 = vpop.xlane.xlu1 %346 }
 0x38a   :  { %v348_v23 = vsub.f32 %v344_v55, %v347_v22 }
 0x38c   :  { %v349_v24 = vmul.f32 1.442695, %v348_v23 }
 0x38e   :  { %1004 = vpow2.f32 %v349_v24 }
 0x390   :  { %v478_v25 = vpop.xlane.xlu2 %477 }
 0x391   :  { %v479_v26 = vsub.f32 %v475_v61, %v478_v25  ;;  %v547_v31 = vpop.xlane.xlu0 %546 }
 0x392   :  { %v548_v43 = vsub.f32 %v544_v63, %v547_v31 }
 0x393   :  { %v480_v27 = vmul.f32 1.442695, %v479_v26 }
 0x394   :  { %v1005_v28 = vpop.eup %1004  ;;  %v549_v46 = vmul.f32 1.442695, %v548_v43 }
 0x395   :  { %1006 = vpow2.f32 %v480_v27  ;;  %v351_v29 = vsel %vm317_vm2, %v1005_v28, 0.0 }
 0x396   :  { %352 = vadd.xlane.f32.xlu2 %v351_v29 }
 0x398   :  { %v408_v30 = vpop.xlane.xlu2 %407 }
 0x399   :  { %v409_v32 = vsub.f32 %v405_v4, %v408_v30 }
 0x39b   :  { %v1523_v33 = vpop.eup %1006  ;;  %v410_v34 = vmul.f32 1.442695, %v409_v32 }
 0x39c   :  { %v482_v35 = vsel %vm317_vm2, %v1523_v33, 0.0 }
 0x39d   :  { %1008 = vpow2.f32 %v410_v34  ;;  %483 = vadd.xlane.f32.xlu0 %v482_v35  ;;  %v854_v34 = vld [vmem:[#allocation8 + $0x18] sm:$0xff]  ;;  %v853_v35 = vld [vmem:[#allocation8 + $0x10] sm:$0xff] }
 0x39e   :  { %873 = vmatpush.msra.mxu0 %v854_v34 }
 0x3a0   :  { %v744_v36 = vpop.xlane.xlu1 %743  ;;  %v614_v37 = vpop.xlane.xlu2 %613  ;;  %874 = vmatpush.msra.mxu0 %v853_v35 }
 0x3a1   :  { %v615_v38 = vsub.f32 %v611_v10, %v614_v37  ;;  %v812_v39 = vpop.xlane.xlu0 %811  ;;  %v745_v59 = vsub.f32 %v1509_v14, %v744_v36  ;;  %v852_v37 = vld [vmem:[#allocation8 + $0x8] sm:$0xff] }
 0x3a2   :  { %v813_v40 = vsub.f32 %v809_v17, %v812_v39  ;;  %875 = vmatpush.msra.mxu0 %v852_v37 }
 0x3a3   :  { %v1009_v41 = vpop.eup %1008  ;;  %v616_v42 = vmul.f32 1.442695, %v615_v38  ;;  %v746_v60 = vmul.f32 1.442695, %v745_v59  ;;  %v851_v38 = vld [vmem:[#allocation8] sm:$0xff] }
 0x3a4   :  { %v814_v44 = vmul.f32 1.442695, %v813_v40  ;;  %v412_v45 = vsel %vm317_vm2, %v1009_v41, 0.0  ;;  %876 = vmatpush.msra.mxu0 %v851_v38 }
 0x3a5   :  { %413 = vadd.xlane.f32.xlu0 %v412_v45  ;;  %1010 = vpow2.f32 %v616_v42 }
 0x3a6   :  { %1012 = vpow2.f32 %v814_v44 }
 0x3a7   :  { %1014 = vpow2.f32 %v549_v46 }
 0x3a8   :  { %v675_v47 = vpop.xlane.xlu1 %674 }
 0x3a9   :  { %v676_v49 = vsub.f32 %v672_v20, %v675_v47 }
 0x3ab   :  { %v1011_v48 = vpop.eup %1010  ;;  %v677_v53 = vmul.f32 1.442695, %v676_v49 }
 0x3ac   :  { %v1528_v50 = vpop.eup %1012  ;;  %v618_v51 = vsel %vm317_vm2, %v1011_v48, 0.0 }
 0x3ad   :  { %619 = vadd.xlane.f32.xlu2 %v618_v51  ;;  %v816_v52 = vsel %vm317_vm2, %v1528_v50, 0.0  ;;  %v1015_v54 = vpop.eup %1014  ;;  %1016 = vpow2.f32 %v677_v53 }
 0x3ae   :  { %817 = vadd.xlane.f32.xlu1 %v816_v52  ;;  %v551_v55 = vsel %vm317_vm2, %v1015_v54, 0.0  ;;  %1018 = vpow2.f32 %v746_v60 }
 0x3b3   :  { %v1017_v56 = vpop.eup %1016 }
 0x3b4   :  { %v679_v57 = vsel %vm317_vm2, %v1017_v56, 0.0  ;;  %v1019_v61 = vpop.eup %1018 }
 0x3b5   :  { %552 = vadd.xlane.f32.xlu2 %v551_v55 }
 0x3b9   :  { %487 = vrot.lane.b32.xlu0 %v1448_v12, %s1331_s13  ;;  %v748_v12 = vsel %vm317_vm2, %v1019_v61, 0.0 }
 0x3bd   :  { %680 = vadd.xlane.f32.xlu2 %v679_v57 }
 0x3c0   :  { %v298_v58 = vpop.permute.xlu1 %297 }
 0x3c1   :  { %300 = vst.msk [vmem:[#allocation20] sm:$0xff] %vm242_vm1, %v298_v58  ;;  %374 = vmatpush.msrb.mxu3 %v298_v58 }
 0x3c3   :  { %435 = vmatpush.msra.mxu3 %v298_v58 }
 0x3d5   :  { %307 = vrot.lane.b32.xlu2 %v1454_v13, %s1330_s12 }
 0x3dd   :  { %753 = vrot.lane.b32.xlu2 %v1454_v13, %s1331_s13 }
 0x3e3   :  { %749 = vadd.xlane.f32.xlu0 %v748_v12 }
 0x409   :  { %v353_v62 = vpop.xlane.xlu2 %352 }
 0x40a   :  { %1020 = vrcp.f32 %v353_v62 }
 0x410   :  { %v1021_v63 = vpop.eup %1020  ;;  %v484_v0 = vpop.xlane.xlu0 %483 }
 0x411   :  { %v355_v1 = vmul.f32 %v1021_v63, %v1005_v28 }
 0x413   :  { %952 = vmatmul.msk.f32.vlgmr.msrb.gmra.mxu3 %vm317_vm2, %v355_v1 }
 0x418   :  { %v414_v2 = vpop.xlane.xlu0 %413 }
 0x419   :  { %1022 = vrcp.f32 %v414_v2 }
 0x41a   :  { %1024 = vrcp.f32 %v484_v0 }
 0x41f   :  { %v1023_v3 = vpop.eup %1022 }
 0x420   :  { %v416_v4 = vmul.f32 %v1023_v3, %v1009_v41  ;;  %v620_v5 = vpop.xlane.xlu2 %619  ;;  %v1025_v13 = vpop.eup %1024 }
 0x421   :  { %v486_v7 = vmul.f32 %v1025_v13, %v1523_v33  ;;  %v818_v14 = vpop.xlane.xlu1 %817 }
 0x422   :  { %955 = vmatmul.msk.f32.vlgmr.msra.gmra.mxu3 %vm317_vm2, %v416_v4 }
 0x428   :  { %v553_v6 = vpop.xlane.xlu2 %552 }
 0x429   :  { %1026 = vrcp.f32 %v553_v6 }
 0x42a   :  { %1028 = vrcp.f32 %v620_v5 }
 0x42b   :  { %v488_v8 = vpop.permute.xlu0 %487 }
 0x42c   :  { %508 = vmatpush.msra.mxu1 %v488_v8  ;;  %574 = vmatpush.msrb.mxu3 %v488_v8 }
 0x42d   :  { %958 = vmatmul.msk.f32.vlgmr.msra.gmra.mxu1 %vm317_vm2, %v486_v7 }
 0x42f   :  { %v1027_v9 = vpop.eup %1026 }
 0x430   :  { %v555_v10 = vmul.f32 %v1027_v9, %v1015_v54  ;;  %v681_v11 = vpop.xlane.xlu2 %680  ;;  %v1029_v15 = vpop.eup %1028 }
 0x431   :  { %1030 = vrcp.f32 %v681_v11  ;;  %v622_v17 = vmul.f32 %v1029_v15, %v1011_v48 }
 0x432   :  { %961 = vmatmul.msk.f32.vlgmr.msrb.gmra.mxu3 %vm317_vm2, %v555_v10  ;;  %1032 = vrcp.f32 %v818_v14 }
 0x437   :  { %v1031_v16 = vpop.eup %1030 }
 0x438   :  { %v683_v18 = vmul.f32 %v1031_v16, %v1017_v56  ;;  %v308_v19 = vpop.permute.xlu2 %307  ;;  %v1033_v20 = vpop.eup %1032 }
 0x439   :  { %311 = vst.msk [vmem:[#allocation20 + $0x8] sm:$0xff] %vm242_vm1, %v308_v19  ;;  %641 = vmatpush.msrb.mxu1 %v308_v19  ;;  %702 = vmatpush.msra.mxu3 %v308_v19  ;;  %v820_v21 = vmul.f32 %v1033_v20, %v1528_v50 }
 0x43a   :  { %964 = vmatmul.msk.f32.vlgmr.msrb.gmra.mxu1 %vm317_vm2, %v622_v17  ;;  %967 = vmatmul.msk.f32.vlgmr.msra.gmra.mxu3 %vm317_vm2, %v683_v18  ;;  %924 = dma.vmem_to_hbm [thread:$0]  %s917_s25, 256, %s919_s24, [#allocation19], %s1315_s21, %s1335_s2, %s1316_s22  }
 0x440   :  { %v754_v22 = vpop.permute.xlu2 %753 }
 0x441   :  { %774 = vmatpush.msra.mxu1 %v754_v22  ;;  %839 = vmatpush.msrb.mxu3 %v754_v22 }
 0x442   :  { %973 = vmatmul.msk.f32.vlgmr.msrb.gmra.mxu3 %vm317_vm2, %v820_v21 }
 0x456   :  { %v750_v23 = vpop.xlane.xlu0 %749 }
 0x457   :  { %1034 = vrcp.f32 %v750_v23 }
 0x45d   :  { %v1035_v24 = vpop.eup %1034 }
 0x45e   :  { %v752_v25 = vmul.f32 %v1035_v24, %v1019_v61 }
 0x460   :  { %970 = vmatmul.msk.f32.vlgmr.msra.gmra.mxu1 %vm317_vm2, %v752_v25 }
 0x496   :  { %v376_v26 = vpop.f32.mrf.mxu3 }
 0x497   :  { %379 = vst.msk [vmem:[#allocation2] sm:$0xff] %vm317_vm2, %v376_v26 }
 0x4a5   :  { %v437_v27 = vpop.f32.mrf.mxu3 }
 0x4a6   :  { %441 = vrot.lane.b32.xlu2 %v437_v27, %s1316_s22 }
 0x4aa   :  { %v510_v28 = vpop.f32.mrf.mxu1 }
 0x4ab   :  { %514 = vrot.lane.b32.xlu1 %v510_v28, %s1332_s14 }
 0x4b5   :  { %v576_v29 = vpop.f32.mrf.mxu3 }
 0x4b6   :  { %580 = vrot.lane.b32.xlu2 %v576_v29, %s1333_s0 }
 0x4b7   :  { %v643_v30 = vpop.f32.mrf.mxu1 }
 0x4b8   :  { %646 = vst.msk [vmem:[#allocation2 + $0x8] sm:$0xff] %vm317_vm2, %v643_v30 }
 0x4bd   :  { %v704_v31 = vpop.f32.mrf.mxu3 }
 0x4be   :  { %708 = vrot.lane.b32.xlu0 %v704_v31, %s1316_s22 }
 0x4c5   :  { %v841_v33 = vpop.f32.mrf.mxu3 }
 0x4dd   :  { %v776_v32 = vpop.f32.mrf.mxu1 }
 0x4de   :  { %780 = vrot.lane.b32.xlu2 %v776_v32, %s1332_s14 }
 0x4e6   :  { %845 = vrot.lane.b32.xlu2 %v841_v33, %s1333_s0 }
 0x500   :  { %v442_v36 = vpop.permute.xlu2 %441 }
 0x501   :  { %445 = vst.msk [vmem:[#allocation2] sm:$0xff] %vm444_vm4, %v442_v36 }
 0x510   :  { %v581_v40 = vpop.permute.xlu2 %580 }
 0x51d   :  { %v515_v39 = vpop.permute.xlu1 %514 }
 0x51e   :  { %518 = vst.msk [vmem:[#allocation2] sm:$0xff] %vm517_vm5, %v515_v39 }
 0x51f   :  { %584 = vst.msk [vmem:[#allocation2] sm:$0xff] %vm583_vm6, %v581_v40 }
 0x526   :  { %v849_v41 = vld [vmem:[#allocation2] sm:$0xff] }
 0x527   :  { %974 = vmatmul.msk.f32.vlgmr.msra.gmra.mxu0 %vm165_vm0, %v849_v41 }
 0x530   :  { %v709_v42 = vpop.permute.xlu0 %708 }
 0x531   :  { %711 = vst.msk [vmem:[#allocation2 + $0x8] sm:$0xff] %vm444_vm4, %v709_v42 }
 0x538   :  { %v781_v43 = vpop.permute.xlu2 %780 }
 0x539   :  { %783 = vst.msk [vmem:[#allocation2 + $0x8] sm:$0xff] %vm517_vm5, %v781_v43 }
 0x540   :  { %v846_v44 = vpop.permute.xlu2 %845 }
 0x541   :  { %848 = vst.msk [vmem:[#allocation2 + $0x8] sm:$0xff] %vm583_vm6, %v846_v44 }
 0x548   :  { %v850_v45 = vld [vmem:[#allocation2 + $0x8] sm:$0xff] }
 0x549   :  { %975 = vmatmul.msk.f32.gmra.mxu0 %vm165_vm0, %v850_v45 }
 0x5a4   :  { %v878_v46 = vpop.f32.mrf.mxu0 }
 0x5a5   :  { %884 = vst.msk [vmem:[#allocation17] sm:$0xff] %vm165_vm0, %v878_v46 }
 0x5c6   :  { %v881_v47 = vpop.f32.mrf.mxu0 }
 0x5c7   :  { %885 = vst.msk [vmem:[#allocation17 + $0x8] sm:$0xff] %vm165_vm0, %v881_v47 }
 0x5c8   :  { %898 = dma.vmem_to_hbm [thread:$0]  %s891_s26, 256, %s893_s27, [#allocation5], %s1315_s21, %s1315_s21, %s1316_s22  }
 0x5c9   :  { %1310 = dma.done.wait [#allocation5], 256  }
 0x5ca   :  { %1311 = vsyncadd [#allocation5], 4294967040 }
 0x5cb   :  { %1312 = dma.done.wait [#allocation19], 512  }
 0x5cc   :  { %1313 = vsyncadd [#allocation19], 4294966784 }
 0x5cd   :  { %937 = vsyncpa [#allocation4], 1 }
 0x5ce   :  { %938 = vsyncpa [#allocation7], 1 }
 0x5cf   :  { %939 = vsyncpa [#allocation10], 1 }
 0x5d0   :  { %940 = vsyncpa [#allocation13], 1 }
 0x5d1   :  { %941 = vsyncpa [#allocation16], 1 }
 0x5d2   :  { %942 = vsyncpa [#allocation5], 1 }
 0x5d3   :  { %943 = vsyncpa [#allocation19], 1 }

</bundles_post_ra>
